<compile_context>
chip_gen: v6e
topology: v6e:2x2x1
jax: 0.10.0
libtpu: 0.0.40
codegen_flags: <defaults>
</compile_context>

<pallas_src>
import jax
import jax.numpy as jnp
from jax.experimental import pallas as pl
from jax.experimental.pallas import tpu as pltpu


def _round_up(x, m):
    return (x + m - 1) // m * m


def _sublane_align(dtype):
    # 8 rows for 32-bit, 16 for bf16/fp16, 32 for 8-bit types.
    return max(8, 32 // jnp.dtype(dtype).itemsize)


def _pick_tile(dim, desired, align, min_frac=0.5):
    """Largest aligned tile <= desired that divides the padded dim (so the
    wrapper needs no extra padding), without shrinking below min_frac*desired;
    otherwise just the aligned desired size (caller pads)."""
    total = _round_up(dim, align)
    desired = min(desired, total)
    desired = max(align, desired - desired % align)
    lo = max(align, (int(desired * min_frac) // align) * align)
    t = desired
    while t >= lo:
        if total % t == 0:
            return t
        t -= align
    return desired


def _hw_defaults():
    kind = ""
    try:
        kind = jax.devices()[0].device_kind.lower()
    except Exception:
        pass
    if "v7" in kind:
        # 64 MiB per-TC VMEM, ~3.2 TB/s per TC: moderate tiles, keep VMEM headroom.
        return dict(tile_m=512, tile_n=512, tile_k=1024,
                    vmem_limit=48 * 1024 * 1024, cores=2)
    if "v6" in kind:
        # 128 MiB VMEM, ~670 flops/byte needed: go big.
        return dict(tile_m=1024, tile_n=1024, tile_k=1024,
                    vmem_limit=96 * 1024 * 1024, cores=1)
    if "v5" in kind:
        # v5e: default scoped VMEM is 16 MiB -> explicit limit is load-bearing.
        return dict(tile_m=512, tile_n=256, tile_k=1024,
                    vmem_limit=64 * 1024 * 1024, cores=1)
    return dict(tile_m=512, tile_n=512, tile_k=1024,
                vmem_limit=64 * 1024 * 1024, cores=1)


def geglu_kernel(x_ref, w_ref, o_ref, acc_ref):
    # Zero the accumulator on the first K step.
    @pl.when(pl.program_id(2) == 0)
    def _():
        acc_ref[...] = jnp.zeros_like(acc_ref)

    x = x_ref[...]
    w = w_ref[...]
    # Native-dtype operands straight to the MXU, f32 accumulation.  For f32
    # activations request HIGHEST precision so numerics match an f32 reference.
    prec = jax.lax.Precision.HIGHEST if x.dtype == jnp.float32 else None
    acc_ref[...] += jnp.dot(x, w, preferred_element_type=jnp.float32,
                            precision=prec)

    # Finalize on the last K step: split gate/up (lane-tile aligned because
    # tile_n is a multiple of 128), exact-erf GELU epilogue, store.
    @pl.when(pl.program_id(2) == pl.num_programs(2) - 1)
    def _():
        tile_n = o_ref.shape[-1]
        acc = acc_ref[...]
        gate = acc[:, :tile_n]
        up = acc[:, tile_n:]
        gelu = 0.5 * gate * (1.0 + jax.lax.erf(gate * 0.7071067811865476))
        o_ref[...] = (gelu * up).astype(o_ref.dtype)


def prepare_geglu_weights(w_gate, w_up, *, tile_n, tile_k, dtype=None):
    """One-time weight prep (model-init time, NOT per forward call).

    Casts to the activation dtype, transposes PyTorch-layout [dim_out, dim_in]
    to [dim_in, dim_out], zero-pads K/N to tile multiples, and interleaves
    gate/up columns per N-tile -> a single [K_pad, 2*N_pad] operand.
    """
    dim_out, dim_in = w_gate.shape
    if dtype is None:
        dtype = w_gate.dtype
    n_pad = _round_up(dim_out, tile_n)
    k_pad = _round_up(dim_in, tile_k)

    def prep(w):
        wt = jnp.transpose(w.astype(dtype))                      # [dim_in, dim_out]
        wt = jnp.pad(wt, ((0, k_pad - dim_in), (0, n_pad - dim_out)))
        return wt.reshape(k_pad, n_pad // tile_n, tile_n)

    w = jnp.concatenate([prep(w_gate), prep(w_up)], axis=2)
    return w.reshape(k_pad, 2 * n_pad)


def geglu_pallas(x, w_fused, dim_out, *, tile_m, tile_n, tile_k, vmem_limit):
    """Hot path: x [..., dim_in], w_fused from prepare_geglu_weights."""
    orig_shape = x.shape
    dim_in = orig_shape[-1]
    k_pad, two_n_pad = w_fused.shape
    n_pad = two_n_pad // 2
    assert k_pad % tile_k == 0 and n_pad % tile_n == 0

    if w_fused.dtype != x.dtype:  # dtype pinning: never let jnp.dot promote.
        w_fused = w_fused.astype(x.dtype)

    x2 = x.reshape(-1, dim_in)
    M = x2.shape[0]
    m_pad = _round_up(M, tile_m)
    if m_pad != M or k_pad != dim_in:   # only pad when actually required
        x2 = jnp.pad(x2, ((0, m_pad - M), (0, k_pad - dim_in)))

    grid = (m_pad // tile_m, n_pad // tile_n, k_pad // tile_k)

    out = pl.pallas_call(
        geglu_kernel,
        out_shape=jax.ShapeDtypeStruct((m_pad, n_pad), x.dtype),
        grid_spec=pltpu.PrefetchScalarGridSpec(
            num_scalar_prefetch=0,
            grid=grid,
            in_specs=[
                pl.BlockSpec((tile_m, tile_k), lambda i, j, k: (i, k)),
                pl.BlockSpec((tile_k, 2 * tile_n), lambda i, j, k: (k, j)),
            ],
            out_specs=pl.BlockSpec((tile_m, tile_n), lambda i, j, k: (i, j)),
            scratch_shapes=[pltpu.VMEM((tile_m, 2 * tile_n), jnp.float32)],
        ),
        compiler_params=pltpu.CompilerParams(
            dimension_semantics=("parallel", "parallel", "arbitrary"),
            vmem_limit_bytes=vmem_limit,
        ),
    )(x2, w_fused)

    if m_pad != M or n_pad != dim_out:  # skip the extra HBM pass when aligned
        out = out[:M, :dim_out]
    return out.reshape(*orig_shape[:-1], dim_out)


def geglu(x, w_gate, w_up, *, tile_m=None, tile_n=None, tile_k=None,
          compute_dtype=None, vmem_limit_bytes=None):
    """Convenience wrapper: generation-specific tiles, weight prep, kernel call.

    compute_dtype=jnp.bfloat16 runs the MXU in bf16 (half the DMA bytes, up to
    ~4x MXU throughput) when the model tolerates it; default keeps x's dtype.
    """
    hw = _hw_defaults()
    tile_m = tile_m or hw["tile_m"]
    tile_n = tile_n or hw["tile_n"]
    tile_k = tile_k or hw["tile_k"]
    vmem_limit = vmem_limit_bytes or hw["vmem_limit"]

    if compute_dtype is not None and x.dtype != compute_dtype:
        x = x.astype(compute_dtype)

    dim_out, dim_in = w_gate.shape
    M = 1
    for d in x.shape[:-1]:
        M *= d

    m_align = _sublane_align(x.dtype)
    tm = _pick_tile(M, tile_m, m_align)
    tn = _pick_tile(dim_out, tile_n, 128)
    tk = _pick_tile(dim_in, tile_k, 128)

    # v7x megacore: if M collapses to a single block (decode-like shapes),
    # keep >= 2 blocks on the N axis so both TensorCores get work.
    if hw["cores"] >= 2 and _round_up(M, m_align) <= tm:
        if _round_up(dim_out, 128) // tn < 2 and tn % 256 == 0:
            tn //= 2

    # Hardware-aligned tiles after clamping (lane-dense stores, aligned split).
    assert tm % m_align == 0 and tn % 128 == 0 and tk % 128 == 0

    # One-time prep (in a real model this lives at init time, not per call).
    w_fused = prepare_geglu_weights(w_gate, w_up, tile_n=tn, tile_k=tk,
                                    dtype=x.dtype)
    return geglu_pallas(x, w_fused, dim_out, tile_m=tm, tile_n=tn, tile_k=tk,
                        vmem_limit=vmem_limit)


def geglu_ref(x, w_gate, w_up):
    hp = jax.lax.Precision.HIGHEST
    gate = jnp.einsum("...k,nk->...n", x, w_gate, precision=hp)
    up = jnp.einsum("...k,nk->...n", x, w_up, precision=hp)
    return jax.nn.gelu(gate, approximate=False) * up


if __name__ == "__main__":
    key = jax.random.PRNGKey(0)
    batch, seq, dim_in, dim_out = 2, 8, 32, 64

    kx, kg, ku = jax.random.split(key, 3)
    x = jax.random.normal(kx, (batch, seq, dim_in), dtype=jnp.float32)
    # Deterministic "Linear" weights, PyTorch layout [dim_out, dim_in].
    bound = 1.0 / (dim_in ** 0.5)
    w_gate = jax.random.uniform(kg, (dim_out, dim_in), jnp.float32, -bound, bound)
    w_up = jax.random.uniform(ku, (dim_out, dim_in), jnp.float32, -bound, bound)

    out = geglu(x, w_gate, w_up)
    out = jax.block_until_ready(out)

    ref = geglu_ref(x, w_gate, w_up)
    assert out.shape == (batch, seq, dim_out)
    assert jnp.allclose(out, ref, atol=1e-5, rtol=1e-5), "mismatch vs reference"
    print("KERNEL_OK")
</pallas_src>

<mosaic_0001>
module attributes {stable_mosaic.version = 11 : i64} {
  func.func @geglu_kernel(%arg0: i32, %arg1: i32, %arg2: i32, %arg3: memref<16x128xf32, #tpu.memory_space<vmem>>, %arg4: memref<128x256xf32, #tpu.memory_space<vmem>>, %arg5: memref<16x128xf32, #tpu.memory_space<vmem>>, %arg6: memref<16x256xf32, #tpu.memory_space<vmem>>) attributes {dimension_semantics = [#tpu.dimension_semantics<parallel>, #tpu.dimension_semantics<parallel>, #tpu.dimension_semantics<arbitrary>], iteration_bounds = array<i64: 1, 1, 1>, scalar_prefetch = 0 : i64, scratch_operands = 1 : i64, tpu.core_type = #tpu.core_type<tc>, window_params = [{transform_indices = @transform_0, window_bounds = array<i64: 16, 128>}, {transform_indices = @transform_1, window_bounds = array<i64: 128, 256>}, {transform_indices = @transform_2, window_bounds = array<i64: 16, 128>}]} {
    %c0_i32 = arith.constant 0 : i32
    %0 = arith.cmpi eq, %arg2, %c0_i32 : i32
    %1 = arith.extui %0 : i1 to i32
    %c0_i32_0 = arith.constant 0 : i32
    %2 = arith.cmpi ne, %1, %c0_i32_0 : i32
    scf.if %2 {
      %cst_10 = arith.constant 0.000000e+00 : f32
      %12 = vector.broadcast %cst_10 : f32 to vector<16x256xf32>
      %c0_11 = arith.constant 0 : index
      %c0_12 = arith.constant 0 : index
      %13 = vector.load %arg6[%c0_11, %c0_12] : memref<16x256xf32, #tpu.memory_space<vmem>>, vector<16x256xf32>
      tpu.vector_store %arg6[%c0_11, %c0_12], %12 {strides = array<i32>} : memref<16x256xf32, #tpu.memory_space<vmem>>, vector<16x256xf32>,
    } else {
    }
    %c0 = arith.constant 0 : index
    %c0_1 = arith.constant 0 : index
    %3 = vector.load %arg3[%c0, %c0_1] : memref<16x128xf32, #tpu.memory_space<vmem>>, vector<16x128xf32>
    %c0_2 = arith.constant 0 : index
    %c0_3 = arith.constant 0 : index
    %4 = vector.load %arg4[%c0_2, %c0_3] : memref<128x256xf32, #tpu.memory_space<vmem>>, vector<128x256xf32>
    %c0_4 = arith.constant 0 : index
    %c0_5 = arith.constant 0 : index
    %5 = vector.load %arg6[%c0_4, %c0_5] : memref<16x256xf32, #tpu.memory_space<vmem>>, vector<16x256xf32>
    %cst = arith.constant dense<0.000000e+00> : vector<16x256xf32>
    %6 = tpu.matmul %3, %4, %cst {dimension_numbers = #tpu.dot_dimension_numbers<[1], [0], [0], [1], [0, 0, 1, 1], [], []>, precision = #tpu.contract_precision<fp32>} : vector<16x128xf32>, vector<128x256xf32>, vector<16x256xf32> -> vector<16x256xf32>
    %7 = arith.addf %5, %6 : vector<16x256xf32>
    %c0_6 = arith.constant 0 : index
    %c0_7 = arith.constant 0 : index
    %8 = vector.load %arg6[%c0_6, %c0_7] : memref<16x256xf32, #tpu.memory_space<vmem>>, vector<16x256xf32>
    tpu.vector_store %arg6[%c0_6, %c0_7], %7 {strides = array<i32>} : memref<16x256xf32, #tpu.memory_space<vmem>>, vector<16x256xf32>,
    %c0_i32_8 = arith.constant 0 : i32
    %9 = arith.cmpi eq, %arg2, %c0_i32_8 : i32
    %10 = arith.extui %9 : i1 to i32
    %c0_i32_9 = arith.constant 0 : i32
    %11 = arith.cmpi ne, %10, %c0_i32_9 : i32
    scf.if %11 {
      %c0_10 = arith.constant 0 : index
      %c0_11 = arith.constant 0 : index
      %12 = vector.load %arg6[%c0_10, %c0_11] : memref<16x256xf32, #tpu.memory_space<vmem>>, vector<16x256xf32>
      %13 = vector.extract_strided_slice %12 {offsets = [0, 0], sizes = [16, 128], strides = [1, 1]} : vector<16x256xf32> to vector<16x128xf32>
      %14 = vector.extract_strided_slice %12 {offsets = [0, 128], sizes = [16, 128], strides = [1, 1]} : vector<16x256xf32> to vector<16x128xf32>
      %cst_12 = arith.constant 5.000000e-01 : f32
      %15 = vector.broadcast %cst_12 : f32 to vector<16x128xf32>
      %16 = arith.mulf %15, %13 : vector<16x128xf32>
      %cst_13 = arith.constant 0.707106769 : f32
      %17 = vector.broadcast %cst_13 : f32 to vector<16x128xf32>
      %18 = arith.mulf %13, %17 : vector<16x128xf32>
      %19 = math.erf %18 : vector<16x128xf32>
      %cst_14 = arith.constant 1.000000e+00 : f32
      %20 = vector.broadcast %cst_14 : f32 to vector<16x128xf32>
      %21 = arith.addf %20, %19 : vector<16x128xf32>
      %22 = arith.mulf %16, %21 : vector<16x128xf32>
      %23 = arith.mulf %22, %14 : vector<16x128xf32>
      %c0_15 = arith.constant 0 : index
      %c0_16 = arith.constant 0 : index
      %24 = vector.load %arg5[%c0_15, %c0_16] : memref<16x128xf32, #tpu.memory_space<vmem>>, vector<16x128xf32>
      tpu.vector_store %arg5[%c0_15, %c0_16], %23 {strides = array<i32>} : memref<16x128xf32, #tpu.memory_space<vmem>>, vector<16x128xf32>,
    } else {
    }
    return
  }
  func.func @transform_0(%arg0: i32, %arg1: i32, %arg2: i32) -> (i32, i32) {
    %c0_i32 = arith.constant 0 : i32
    return %arg0, %arg2 : i32, i32
  }
  func.func @transform_1(%arg0: i32, %arg1: i32, %arg2: i32) -> (i32, i32) {
    %c0_i32 = arith.constant 0 : i32
    return %arg2, %arg1 : i32, i32
  }
  func.func @transform_2(%arg0: i32, %arg1: i32, %arg2: i32) -> (i32, i32) {
    %c0_i32 = arith.constant 0 : i32
    return %arg0, %arg1 : i32, i32
  }
}

</mosaic_0001>

<bundles_post_ra>
// kernel: tpu_custom_call.1
= control target key start
LH: loop header
LB: loop body
LE: loop exit
PB: predicated region body
PF: predicated region fallthrough
CT: control target
= control target key end

     0   :  { %7 = vsyncpa [#allocation4], 0  ;;  %s1767_s0 = inlined_call_operand.hbm [shape: f32[16,128], index: 0, kind: input, shape index: {}]   ;;  %s1768_s1 = inlined_call_operand.hbm [shape: f32[128,256], index: 1, kind: input, shape index: {}]   ;;  %s1769_s2 = inlined_call_operand.hbm [shape: f32[16,128], index: 2, kind: output, shape index: {}]  }
   0x1   :  { %8 = vsyncpa [#allocation7], 0 }
   0x2   :  { %9 = vsyncpa [#allocation5], 0  ;;  %s1115_s9 = smov [#allocation3]  }
   0x3   :  { %s15_s10 = sshll.u32 %s1115_s9, 4  ;;  %s16_s10 = int_to_ptr.vmem [resolvable:$true] %s15_s10 }
   0x4   :  { %s1057_s11 = scalar_lea.vmem %s16_s10, 256  ;;  %p1062_p1 = scmp.lt.s32.totalorder %s16_s10, %s16_s10 }
   0x5   :  { %p1058_p0 = scmp.ne.s32.totalorder %s16_s10, %s1057_s11  ;;  %p1063_p2 = scmp.lt.s32.totalorder %s1057_s11, %s1057_s11 }
   0x7   :  { %p1064_p3 = por %p1063_p2, %p1062_p1 }
   0x9   :  { %p1065_p4 = pnand %p1064_p3, %p1058_p0 }
   0xb   :  { %1068 = shalt.err (!%p1065_p4)
}
   0xc   :  { %s1116_s12 = smov 128   ;;  %s1117_s13 = smov 8  }
   0xd   :  { %21 = dma.hbm_to_vmem [thread:$0]  %s1767_s0, 256, %s16_s10, [#allocation4], %s1116_s12, %s1116_s12, %s1117_s13  }
   0xe   :  { %s1118_s16 = smov [#allocation6]  }
   0xf   :  { %s27_s17 = sshll.u32 %s1118_s16, 4  ;;  %s28_s17 = int_to_ptr.vmem [resolvable:$true] %s27_s17 }
  0x10   :  { %s1077_s18 = scalar_lea.vmem %s28_s17, 4096  ;;  %p1082_p6 = scmp.lt.s32.totalorder %s28_s17, %s28_s17 }
  0x11   :  { %p1078_p5 = scmp.ne.s32.totalorder %s28_s17, %s1077_s18  ;;  %p1083_p7 = scmp.lt.s32.totalorder %s1077_s18, %s1077_s18 }
  0x13   :  { %p1084_p8 = por %p1083_p7, %p1082_p6 }
  0x15   :  { %p1085_p9 = pnand %p1084_p8, %p1078_p5 }
  0x17   :  { %1088 = shalt.err (!%p1085_p9)
}
  0x18   :  { %s1119_s19 = smov 256   ;;  %s1120_s20 = smov 16  }
  0x19   :  { %33 = dma.hbm_to_vmem [thread:$0]  %s1768_s1, 4096, %s28_s17, [#allocation7], %s1119_s19, %s1119_s19, %s1120_s20  }
  0x1a   :  { %1109 = dma.done.wait [#allocation4], 256  }
  0x1b   :  { %1110 = vsyncadd [#allocation4], 4294967040 }
  0x1c   :  { %1111 = dma.done.wait [#allocation7], 4096  }
  0x1d   :  { %1112 = vsyncadd [#allocation7], 4294963200  ;;  %v1784_v0 = vmov 0.0   ;;  %v81_v1 = vld [vmem:[#allocation6 + $0xf8] sm:$0xff]  ;;  %v80_v2 = vld [vmem:[#allocation6 + $0xf0] sm:$0xff]  ;;  %s1122_s0 = smov [#allocation8]  }
  0x1e   :  { %182 = vmatprep.mubr.f32.mxu0 %v1784_v0  ;;  %429 = vmatprep.mubr.f32.mxu1 %v1784_v0  ;;  %v79_v3 = vld [vmem:[#allocation6 + $0xe8] sm:$0xff]  ;;  %v1149_v4 = vand.u32 4294901760, %v81_v1  ;;  %v1151_v5 = vand.u32 4294901760, %v80_v2  ;;  %v78_v7 = vld [vmem:[#allocation6 + $0xe0] sm:$0xff]  ;;  %v77_v8 = vld [vmem:[#allocation6 + $0xd8] sm:$0xff]  ;;  %s1024_s1 = sshll.u32 %s1122_s0, 4  ;;  %s1025_s1 = int_to_ptr.vmem [resolvable:$true] %s1024_s1 }
  0x1f   :  { %v1153_v6 = vand.u32 4294901760, %v79_v3  ;;  %v76_v9 = vld [vmem:[#allocation6 + $0xd0] sm:$0xff]  ;;  %v1155_v10 = vand.u32 4294901760, %v78_v7  ;;  %v1157_v11 = vand.u32 4294901760, %v77_v8  ;;  %v75_v13 = vld [vmem:[#allocation6 + $0xc8] sm:$0xff]  ;;  %v74_v14 = vld [vmem:[#allocation6 + $0xc0] sm:$0xff]  ;;  %p1094_p11 = scmp.lt.s32.totalorder %s1025_s1, %s1025_s1 }
  0x20   :  { %v1159_v12 = vand.u32 4294901760, %v76_v9  ;;  %v73_v15 = vld [vmem:[#allocation6 + $0xb8] sm:$0xff]  ;;  %87 = vmatprep.subr.mxu0 %v1149_v4  ;;  %v1162_v16 = vand.u32 4294901760, %v75_v13  ;;  %v1164_v17 = vand.u32 4294901760, %v74_v14  ;;  %v1169_v19 = vsub.f32 %v81_v1, %v1149_v4  ;;  %v1171_v20 = vld [vmem:[#allocation6 + $0xb0] sm:$0xff]  ;;  %v1173_v21 = vld [vmem:[#allocation6 + $0xa8] sm:$0xff] }
  0x21   :  { %v1166_v18 = vand.u32 4294901760, %v73_v15  ;;  %v1175_v22 = vld [vmem:[#allocation6 + $0xa0] sm:$0xff]  ;;  %89 = vmatpush1.msra.mxu0 %v1151_v5  ;;  %v1179_v23 = vand.u32 4294901760, %v1171_v20  ;;  %v1182_v24 = vsub.f32 %v80_v2, %v1151_v5  ;;  %v1185_v25 = vand.u32 4294901760, %v1173_v21  ;;  %v1190_v27 = vld [vmem:[#allocation6 + $0x98] sm:$0xff]  ;;  %v1192_v28 = vld [vmem:[#allocation6 + $0x90] sm:$0xff] }
  0x22   :  { %v1188_v26 = vsub.f32 %v79_v3, %v1153_v6  ;;  %v1194_v29 = vld [vmem:[#allocation6 + $0x88] sm:$0xff]  ;;  %91 = vmatprep.subr.mxu0 %v1153_v6  ;;  %v1782_v30 = vand.u32 4294901760, %v1169_v19  ;;  %v1199_v31 = vand.u32 4294901760, %v1175_v22  ;;  %v1202_v32 = vsub.f32 %v78_v7, %v1155_v10  ;;  %v1216_v38 = vld [vmem:[#allocation6 + $0x80] sm:$0xff]  ;;  %v1240_v47 = vld [vmem:[#allocation6 + $0x78] sm:$0xff]  ;;  %s1089_s23 = scalar_lea.vmem %s1025_s1, 256 }
  0x23   :  { %v1205_v33 = vand.u32 4294901760, %v1190_v27  ;;  %93 = vmatpush1.msra.mxu0 %v1155_v10  ;;  %v1781_v34 = vand.u32 4294901760, %v1182_v24  ;;  %v1211_v36 = vsub.f32 %v77_v8, %v1157_v11  ;;  %v1214_v37 = vand.u32 4294901760, %v1192_v28  ;;  %v1250_v52 = vld [vmem:[#allocation6 + $0x70] sm:$0xff]  ;;  %v1257_v57 = vld [vmem:[#allocation6 + $0x68] sm:$0xff]  ;;  %v1269_v62 = vld [vmem:[#allocation6 + $0x60] sm:$0xff]  ;;  %p1090_p10 = scmp.ne.s32.totalorder %s1025_s1, %s1089_s23  ;;  %p1095_p12 = scmp.lt.s32.totalorder %s1089_s23, %s1089_s23 }
  0x24   :  { %1837 = vst [vmem:[#allocation12_spill] sm:$0xff] %v1199_v31  ;;  %v1779_v35 = vand.u32 4294901760, %v1188_v26  ;;  %95 = vmatprep.subr.mxu0 %v1157_v11  ;;  %v208_v39 = vsub.f32 %v1169_v19, %v1782_v30  ;;  %v1777_v40 = vand.u32 4294901760, %v1202_v32  ;;  %v1224_v41 = vsub.f32 %v76_v9, %v1159_v12  ;;  %v1281_v7 = vld [vmem:[#allocation6 + $0x58] sm:$0xff] }
  0x25   :  { %1838 = vst [vmem:[#allocation13_spill] sm:$0xff] %v1205_v33  ;;  %1839 = vst [vmem:[#allocation14_spill] sm:$0xff] %v1214_v37  ;;  %v1227_v42 = vand.u32 4294901760, %v1194_v29  ;;  %97 = vmatpush1.msra.mxu0 %v1159_v12  ;;  %v214_v43 = vsub.f32 %v1182_v24, %v1781_v34  ;;  %v1776_v45 = vand.u32 4294901760, %v1211_v36  ;;  %v1238_v46 = vsub.f32 %v75_v13, %v1162_v16  ;;  %v1382_v34 = vld [vmem:[#allocation6 + $0x20] sm:$0xff]  ;;  %p1096_p13 = por %p1095_p12, %p1094_p11 }
  0x26   :  { %v220_v44 = vsub.f32 %v1188_v26, %v1779_v35  ;;  %99 = vmatprep.subr.mxu0 %v1162_v16  ;;  %v209_v48 = vand.u32 4294901760, %v208_v39  ;;  %v226_v49 = vsub.f32 %v1202_v32, %v1777_v40  ;;  %v1774_v50 = vand.u32 4294901760, %v1224_v41  ;;  %v1372_v35 = vld [vmem:[#allocation6 + $0x28] sm:$0xff] }
  0x27   :  { %1840 = vst [vmem:[#allocation15_spill] sm:$0xff] %v1227_v42  ;;  %v1248_v51 = vand.u32 4294901760, %v1216_v38  ;;  %101 = vmatpush1.msra.mxu0 %v1164_v17  ;;  %v215_v53 = vand.u32 4294901760, %v214_v43  ;;  %v232_v55 = vsub.f32 %v1211_v36, %v1776_v45  ;;  %v1772_v56 = vand.u32 4294901760, %v1238_v46  ;;  %v1359_v45 = vld [vmem:[#allocation6 + $0x30] sm:$0xff]  ;;  %p1097_p0 = pnand %p1096_p13, %p1090_p10 }
  0x28   :  { %v221_v54 = vand.u32 4294901760, %v220_v44  ;;  %103 = vmatprep.subr.mxu0 %v1166_v18  ;;  %210 = vmatprep.subr.mxu1 %v209_v48  ;;  %v227_v58 = vand.u32 4294901760, %v226_v49  ;;  %v238_v59 = vsub.f32 %v1224_v41, %v1774_v50  ;;  %v1264_v60 = vsub.f32 %v74_v14, %v1164_v17 }
  0x29   :  { %1841 = vst [vmem:[#allocation16_spill] sm:$0xff] %v1248_v51  ;;  %v1267_v61 = vand.u32 4294901760, %v1240_v47  ;;  %105 = vmatpush1.msra.mxu0 %v1179_v23  ;;  %216 = vmatpush1.msra.mxu1 %v215_v53  ;;  %v233_v63 = vand.u32 4294901760, %v232_v55  ;;  %v244_v1 = vsub.f32 %v1238_v46, %v1772_v56  ;;  %v1276_v2 = vsub.f32 %v73_v15, %v1166_v18  ;;  %v1292_v15 = vld [vmem:[#allocation6 + $0x50] sm:$0xff] }
  0x2a   :  { %v1279_v3 = vand.u32 4294901760, %v1250_v52  ;;  %107 = vmatprep.subr.mxu0 %v1185_v25  ;;  %222 = vmatprep.subr.mxu1 %v221_v54  ;;  %v239_v8 = vand.u32 4294901760, %v238_v59  ;;  %v1771_v9 = vand.u32 4294901760, %v1264_v60  ;;  %v1287_v13 = vsub.f32 %v1171_v20, %v1179_v23 }
  0x2b   :  { %1842 = vst [vmem:[#allocation17_spill] sm:$0xff] %v1267_v61  ;;  %v1290_v14 = vand.u32 4294901760, %v1257_v57  ;;  %109 = vmatpush1.msra.mxu0 %v1199_v31  ;;  %228 = vmatpush1.msra.mxu1 %v227_v58  ;;  %v245_v39 = vand.u32 4294901760, %v244_v1  ;;  %v1770_v43 = vand.u32 4294901760, %v1276_v2  ;;  %v1298_v44 = vsub.f32 %v1173_v21, %v1185_v25  ;;  %v1315_v21 = vld [vmem:[#allocation6 + $0x48] sm:$0xff] }
  0x2c   :  { %1843 = vst [vmem:[#allocation18_spill] sm:$0xff] %v1279_v3  ;;  %v1301_v48 = vand.u32 4294901760, %v1269_v62  ;;  %111 = vmatprep.subr.mxu0 %v1205_v33  ;;  %234 = vmatprep.subr.mxu1 %v233_v63  ;;  %v250_v20 = vsub.f32 %v1264_v60, %v1771_v9  ;;  %v1773_v49 = vand.u32 4294901760, %v1287_v13  ;;  %v1310_v53 = vsub.f32 %v1175_v22, %v1199_v31  ;;  %v1338_v9 = vld [vmem:[#allocation6 + $0x40] sm:$0xff] }
  0x2d   :  { %1844 = vst [vmem:[#allocation19_spill] sm:$0xff] %v1290_v14  ;;  %v1313_v54 = vand.u32 4294901760, %v1281_v7  ;;  %113 = vmatpush1.msra.mxu0 %v1214_v37  ;;  %240 = vmatpush1.msra.mxu1 %v239_v8  ;;  %v256_v55 = vsub.f32 %v1276_v2, %v1770_v43  ;;  %v1775_v58 = vand.u32 4294901760, %v1298_v44  ;;  %v1324_v59 = vsub.f32 %v1190_v27, %v1205_v33  ;;  %v48_v33 = vld [vmem:[#allocation3] sm:$0xff] }
  0x2e   :  { %1845 = vst [vmem:[#allocation20_spill] sm:$0xff] %v1301_v48  ;;  %v1327_v22 = vand.u32 4294901760, %v1292_v15  ;;  %115 = vmatprep.subr.mxu0 %v1227_v42  ;;  %246 = vmatprep.subr.mxu1 %v245_v39  ;;  %v251_v63 = vand.u32 4294901760, %v250_v20  ;;  %v262_v1 = vsub.f32 %v1287_v13, %v1773_v49  ;;  %v1778_v8 = vand.u32 4294901760, %v1310_v53  ;;  %v1348_v49 = vld [vmem:[#allocation6 + $0x38] sm:$0xff] }
  0x2f   :  { %1846 = vst [vmem:[#allocation21_spill] sm:$0xff] %v1313_v54  ;;  %v1336_v43 = vsub.f32 %v1192_v28, %v1214_v37  ;;  %117 = vmatpush1.msra.mxu0 %v1248_v51  ;;  %v257_v27 = vand.u32 4294901760, %v256_v55  ;;  %v268_v39 = vsub.f32 %v1298_v44, %v1775_v58  ;;  %v1780_v20 = vand.u32 4294901760, %v1324_v59 }
  0x30   :  { %1847 = vst [vmem:[#allocation22_spill] sm:$0xff] %v1327_v22  ;;  %v1346_v56 = vand.u32 4294901760, %v1315_v21  ;;  %252 = vmatpush1.msra.mxu1 %v251_v63  ;;  %119 = vmatprep.subr.mxu0 %v1267_v61  ;;  %v263_v28 = vand.u32 4294901760, %v262_v1  ;;  %v274_v50 = vsub.f32 %v1310_v53, %v1778_v8  ;;  %v1357_v58 = vsub.f32 %v1194_v29, %v1227_v42 }
  0x31   :  { %v1783_v55 = vand.u32 4294901760, %v1336_v43  ;;  %258 = vmatprep.subr.mxu1 %v257_v27  ;;  %121 = vmatpush1.msra.mxu0 %v1279_v3  ;;  %v269_v40 = vand.u32 4294901760, %v268_v39  ;;  %v280_v63 = vsub.f32 %v1324_v59, %v1780_v20  ;;  %v1366_v1 = vand.u32 4294901760, %v1338_v9 }
  0x32   :  { %1848 = vst [vmem:[#allocation23_spill] sm:$0xff] %v1346_v56  ;;  %v1370_v8 = vsub.f32 %v1216_v38, %v1248_v51  ;;  %264 = vmatpush1.msra.mxu1 %v263_v28  ;;  %123 = vmatprep.subr.mxu0 %v1290_v14  ;;  %v275_v29 = vand.u32 4294901760, %v274_v50  ;;  %v1788_v39 = vand.u32 4294901760, %v1357_v58  ;;  %v1380_v20 = vand.u32 4294901760, %v1348_v49 }
  0x33   :  { %1849 = vst [vmem:[#allocation24_spill] sm:$0xff] %v1366_v1  ;;  %v286_v27 = vsub.f32 %v1336_v43, %v1783_v55  ;;  %270 = vmatprep.subr.mxu1 %v269_v40  ;;  %125 = vmatpush1.msra.mxu0 %v1301_v48  ;;  %v281_v38 = vand.u32 4294901760, %v280_v63  ;;  %v1388_v50 = vsub.f32 %v1240_v47, %v1267_v61  ;;  %v1391_v30 = vand.u32 4294901760, %v1359_v45  ;;  %v1393_v55 = vld [vmem:[#allocation6 + $0x18] sm:$0xff] }
  0x34   :  { %1850 = vst [vmem:[#allocation25_spill] sm:$0xff] %v1380_v20  ;;  %v1791_v28 = vand.u32 4294901760, %v1370_v8  ;;  %276 = vmatpush1.msra.mxu1 %v275_v29  ;;  %127 = vmatprep.subr.mxu0 %v1313_v54  ;;  %v292_v40 = vsub.f32 %v1357_v58, %v1788_v39  ;;  %v1401_v63 = vsub.f32 %v1250_v52, %v1279_v3  ;;  %v1404_v47 = vand.u32 4294901760, %v1372_v35  ;;  %v1418_v52 = vld [vmem:[#allocation6 + $0x10] sm:$0xff] }
  0x35   :  { %1851 = vst [vmem:[#allocation26_spill] sm:$0xff] %v1391_v30  ;;  %v287_v0 = vand.u32 4294901760, %v286_v27  ;;  %282 = vmatprep.subr.mxu1 %v281_v38  ;;  %129 = vmatpush1.msra.mxu0 %v1327_v22  ;;  %v1413_v61 = vsub.f32 %v1257_v57, %v1290_v14  ;;  %v1416_v39 = vand.u32 4294901760, %v1382_v34  ;;  %v1427_v27 = vand.u32 4294901760, %v1393_v55  ;;  %v1429_v57 = vld [vmem:[#allocation6 + $0x8] sm:$0xff] }
  0x36   :  { %1852 = vst [vmem:[#allocation27_spill] sm:$0xff] %v1404_v47  ;;  %v298_v29 = vsub.f32 %v1370_v8, %v1791_v28  ;;  %131 = vmatprep.subr.mxu0 %v1346_v56  ;;  %v293_v38 = vand.u32 4294901760, %v292_v40  ;;  %v1424_v28 = vsub.f32 %v1269_v62, %v1301_v48  ;;  %v1854_v51 = vand.u32 4294901760, %v1388_v50  ;;  %v1452_v40 = vld [vmem:[#allocation6] sm:$0xff] }
  0x37   :  { %1853 = vst [vmem:[#allocation28_spill] sm:$0xff] %v1416_v39  ;;  %288 = vmatpush1.msra.mxu1 %v287_v0  ;;  %133 = vmatpush1.msra.mxu0 %v1366_v1  ;;  %v1438_v3 = vsub.f32 %v1281_v7, %v1313_v54  ;;  %v1855_v62 = vand.u32 4294901760, %v1401_v63  ;;  %v1460_v42 = vand.u32 4294901760, %v1429_v57  ;;  %v1476_v31 = vand.u32 4294901760, %v1452_v40 }
  0x38   :  { %v299_v14 = vand.u32 4294901760, %v298_v29  ;;  %v304_v0 = vsub.f32 %v1388_v50, %v1854_v51  ;;  %294 = vmatprep.subr.mxu1 %v293_v38  ;;  %135 = vmatprep.subr.mxu0 %v1380_v20  ;;  %v1446_v29 = vand.u32 4294901760, %v1418_v52  ;;  %v1450_v51 = vsub.f32 %v1292_v15, %v1327_v22 }
  0x39   :  { %v310_v48 = vsub.f32 %v1401_v63, %v1855_v62  ;;  %137 = vmatpush1.msra.mxu0 %v1391_v30  ;;  %v1857_v38 = vand.u32 4294901760, %v1413_v61  ;;  %v1810_v62 = vand.u32 4294901760, %v1438_v3  ;;  %v1858_v15 = vand.u32 4294901760, %v1424_v28 }
  0x3a   :  { %1856 = vst [vmem:[#allocation29_spill] sm:$0xff] %v1446_v29  ;;  %300 = vmatpush1.msra.mxu1 %v299_v14  ;;  %v305_v7 = vand.u32 4294901760, %v304_v0  ;;  %139 = vmatprep.subr.mxu0 %v1404_v47  ;;  %v1469_v0 = vsub.f32 %v1315_v21, %v1346_v56  ;;  %v1859_v21 = vand.u32 4294901760, %v1450_v51 }
  0x3b   :  { %v316_v54 = vsub.f32 %v1413_v61, %v1857_v38  ;;  %v311_v37 = vand.u32 4294901760, %v310_v48  ;;  %v322_v22 = vsub.f32 %v1424_v28, %v1858_v15  ;;  %141 = vmatpush1.msra.mxu0 %v1416_v39  ;;  %v328_v48 = vsub.f32 %v1438_v3, %v1810_v62 }
  0x3c   :  { %306 = vmatprep.subr.mxu1 %v305_v7  ;;  %v1480_v15 = vsub.f32 %v1338_v9, %v1366_v1  ;;  %143 = vmatprep.subr.mxu0 %v1427_v27  ;;  %v1813_v7 = vand.u32 4294901760, %v1469_v0  ;;  %v1489_v62 = vsub.f32 %v1348_v49, %v1380_v20 }
  0x3d   :  { %v317_v38 = vand.u32 4294901760, %v316_v54  ;;  %312 = vmatpush1.msra.mxu1 %v311_v37  ;;  %v323_v14 = vand.u32 4294901760, %v322_v22  ;;  %v334_v54 = vsub.f32 %v1450_v51, %v1859_v21  ;;  %v329_v56 = vand.u32 4294901760, %v328_v48  ;;  %145 = vmatpush1.msra.mxu0 %v1446_v29 }
  0x3e   :  { %v1816_v9 = vand.u32 4294901760, %v1480_v15  ;;  %v1493_v37 = vand.u32 4294901760, %v48_v33  ;;  %v1497_v22 = vsub.f32 %v1359_v45, %v1391_v30  ;;  %147 = vmatprep.subr.mxu0 %v1460_v42  ;;  %v340_v49 = vsub.f32 %v1469_v0, %v1813_v7 }
  0x3f   :  { %318 = vmatprep.subr.mxu1 %v317_v38  ;;  %v335_v21 = vand.u32 4294901760, %v334_v54  ;;  %v1506_v48 = vsub.f32 %v1372_v35, %v1404_v47  ;;  %149 = vmatpush1.msra.mxu0 %v1476_v31  ;;  %v1518_v7 = vsub.f32 %v1382_v34, %v1416_v39  ;;  %v1861_v35 = vand.u32 4294901760, %v1489_v62 }
  0x40   :  { %1860 = vst [vmem:[#allocation30_spill] sm:$0xff] %v1493_v37  ;;  %324 = vmatpush1.msra.mxu1 %v323_v14  ;;  %v346_v45 = vsub.f32 %v1480_v15, %v1816_v9  ;;  %v1513_v14 = vsub.f32 %v48_v33, %v1493_v37  ;;  %v341_v38 = vand.u32 4294901760, %v340_v49  ;;  %446 = vmatprep.subr.mxu0 %v1169_v19  ;;  %v1862_v34 = vand.u32 4294901760, %v1497_v22 }
  0x41   :  { %330 = vmatprep.subr.mxu1 %v329_v56  ;;  %v352_v56 = vsub.f32 %v1489_v62, %v1861_v35  ;;  %v1821_v47 = vand.u32 4294901760, %v1506_v48  ;;  %v1527_v33 = vsub.f32 %v1393_v55, %v1427_v27  ;;  %v1825_v49 = vand.u32 4294901760, %v1518_v7 }
  0x42   :  { %336 = vmatpush1.msra.mxu1 %v335_v21  ;;  %v347_v9 = vand.u32 4294901760, %v346_v45  ;;  %v1822_v54 = vand.u32 4294901760, %v1513_v14  ;;  %v358_v21 = vsub.f32 %v1497_v22, %v1862_v34  ;;  %v1540_v55 = vsub.f32 %v1418_v52, %v1446_v29 }
  0x43   :  { %342 = vmatprep.subr.mxu1 %v341_v38  ;;  %v353_v39 = vand.u32 4294901760, %v352_v56  ;;  %v364_v35 = vsub.f32 %v1506_v48, %v1821_v47  ;;  %v1829_v30 = vand.u32 4294901760, %v1527_v33  ;;  %v370_v38 = vsub.f32 %v1518_v7, %v1825_v49 }
  0x44   :  { %348 = vmatpush1.msra.mxu1 %v347_v9  ;;  %v186_v45 = vsub.f32 %v1513_v14, %v1822_v54  ;;  %v359_v34 = vand.u32 4294901760, %v358_v21  ;;  %v1550_v56 = vsub.f32 %v1429_v57, %v1460_v42  ;;  %v1828_v9 = vand.u32 4294901760, %v1540_v55 }
  0x45   :  { %354 = vmatprep.subr.mxu1 %v353_v39  ;;  %v365_v47 = vand.u32 4294901760, %v364_v35  ;;  %v376_v52 = vsub.f32 %v1527_v33, %v1829_v30  ;;  %v1558_v54 = vsub.f32 %v1452_v40, %v1476_v31  ;;  %v371_v29 = vand.u32 4294901760, %v370_v38  ;;  %v1873_v30 = vld [vmem:[#allocation19_spill] sm:$0xff] }
  0x46   :  { %1863 = vst [vmem:[#allocation31_spill] sm:$0xff] %v1550_v56  ;;  %v187_v21 = vand.u32 4294901760, %v186_v45  ;;  %360 = vmatpush1.msra.mxu1 %v359_v34  ;;  %v1827_v49 = vand.u32 4294901760, %v1550_v56  ;;  %v382_v39 = vsub.f32 %v1540_v55, %v1828_v9  ;;  %v1865_v38 = vmov 0.0  }
  0x47   :  { %1864 = vst [vmem:[#allocation32_spill] sm:$0xff] %v1558_v54  ;;  %366 = vmatprep.subr.mxu1 %v365_v47  ;;  %v377_v57 = vand.u32 4294901760, %v376_v52  ;;  %v1826_v35 = vand.u32 4294901760, %v1558_v54  ;;  %v49_v52 = vld [vmem:[#allocation3 + $0x8] sm:$0xff] }
  0x48   :  { %188 = vmatmul.mubr.f32.vlgmr.msra.gmra.mxu0 %v187_v21  ;;  %372 = vmatpush1.msra.mxu1 %v371_v29  ;;  %v388_v40 = vsub.f32 %v1550_v56, %v1827_v49  ;;  %v383_v45 = vand.u32 4294901760, %v382_v39  ;;  %v1583_v21 = vand.u32 4294901760, %v49_v52  ;;  %v1872_v49 = vld [vmem:[#allocation18_spill] sm:$0xff] }
  0x49   :  { %449 = vmatpush1.msra.mxu0 %v1182_v24  ;;  %378 = vmatprep.subr.mxu1 %v377_v57  ;;  %v394_v47 = vsub.f32 %v1558_v54, %v1826_v35  ;;  %v1871_v35 = vld [vmem:[#allocation17_spill] sm:$0xff] }
  0x4a   :  { %452 = vmatprep.subr.mxu0 %v1188_v26  ;;  %v389_v34 = vand.u32 4294901760, %v388_v40  ;;  %193 = vmatprep.mubr.f32.mxu0 %v1865_v38  ;;  %v1594_v57 = vsub.f32 %v49_v52, %v1583_v21  ;;  %v1866_v40 = vld [vmem:[#allocation12_spill] sm:$0xff] }
  0x4b   :  { %455 = vmatpush1.msra.mxu0 %v1202_v32  ;;  %384 = vmatpush1.msra.mxu1 %v383_v45  ;;  %v395_v29 = vand.u32 4294901760, %v394_v47  ;;  %v1867_v45 = vld [vmem:[#allocation13_spill] sm:$0xff]  ;;  %v1868_v47 = vld [vmem:[#allocation14_spill] sm:$0xff]  ;;  %v1870_v52 = vld [vmem:[#allocation16_spill] sm:$0xff] }
  0x4c   :  { %458 = vmatprep.subr.mxu0 %v1211_v36  ;;  %390 = vmatprep.subr.mxu1 %v389_v34  ;;  %v1830_v39 = vand.u32 4294901760, %v1594_v57 }
  0x4d   :  { %461 = vmatpush1.msra.mxu0 %v1224_v41  ;;  %396 = vmatpush1.msra.mxu1 %v395_v29  ;;  %v1869_v29 = vld [vmem:[#allocation15_spill] sm:$0xff] }
  0x4e   :  { %464 = vmatprep.subr.mxu0 %v1238_v46  ;;  %431 = vmatmul.mubr.f32.vlgmr.msra.gmra.mxu1 %v1493_v37  ;;  %v197_v34 = vsub.f32 %v1594_v57, %v1830_v39  ;;  %v1874_v39 = vld [vmem:[#allocation20_spill] sm:$0xff]  ;;  %v1875_v37 = vld [vmem:[#allocation21_spill] sm:$0xff] }
  0x4f   :  { %467 = vmatpush1.msra.mxu0 %v1264_v60  ;;  %590 = vmatprep.subr.mxu1 %v1149_v4 }
  0x50   :  { %470 = vmatprep.subr.mxu0 %v1276_v2  ;;  %592 = vmatpush1.msra.mxu1 %v1151_v5  ;;  %v198_v9 = vand.u32 4294901760, %v197_v34  ;;  %v1877_v34 = vld [vmem:[#allocation23_spill] sm:$0xff] }
  0x51   :  { %473 = vmatpush1.msra.mxu0 %v1287_v13  ;;  %594 = vmatprep.subr.mxu1 %v1153_v6 }
  0x52   :  { %476 = vmatprep.subr.mxu0 %v1298_v44  ;;  %596 = vmatpush1.msra.mxu1 %v1155_v10 }
  0x53   :  { %479 = vmatpush1.msra.mxu0 %v1310_v53  ;;  %598 = vmatprep.subr.mxu1 %v1157_v11 }
  0x54   :  { %482 = vmatprep.subr.mxu0 %v1324_v59  ;;  %600 = vmatpush1.msra.mxu1 %v1159_v12 }
  0x55   :  { %485 = vmatpush1.msra.mxu0 %v1336_v43  ;;  %602 = vmatprep.subr.mxu1 %v1162_v16 }
  0x56   :  { %488 = vmatprep.subr.mxu0 %v1357_v58  ;;  %604 = vmatpush1.msra.mxu1 %v1164_v17 }
  0x57   :  { %491 = vmatpush1.msra.mxu0 %v1370_v8  ;;  %606 = vmatprep.subr.mxu1 %v1166_v18 }
  0x58   :  { %494 = vmatprep.subr.mxu0 %v1388_v50  ;;  %608 = vmatpush1.msra.mxu1 %v1179_v23 }
  0x59   :  { %497 = vmatpush1.msra.mxu0 %v1401_v63  ;;  %610 = vmatprep.subr.mxu1 %v1185_v25 }
  0x5a   :  { %500 = vmatprep.subr.mxu0 %v1413_v61  ;;  %612 = vmatpush1.msra.mxu1 %v1866_v40 }
  0x5b   :  { %503 = vmatpush1.msra.mxu0 %v1424_v28  ;;  %614 = vmatprep.subr.mxu1 %v1867_v45 }
  0x5c   :  { %506 = vmatprep.subr.mxu0 %v1438_v3  ;;  %616 = vmatpush1.msra.mxu1 %v1868_v47 }
  0x5d   :  { %509 = vmatpush1.msra.mxu0 %v1450_v51  ;;  %618 = vmatprep.subr.mxu1 %v1869_v29 }
  0x5e   :  { %512 = vmatprep.subr.mxu0 %v1469_v0  ;;  %620 = vmatpush1.msra.mxu1 %v1870_v52 }
  0x5f   :  { %515 = vmatpush1.msra.mxu0 %v1480_v15  ;;  %622 = vmatprep.subr.mxu1 %v1871_v35  ;;  %v1876_v35 = vld [vmem:[#allocation22_spill] sm:$0xff] }
  0x60   :  { %518 = vmatprep.subr.mxu0 %v1489_v62  ;;  %624 = vmatpush1.msra.mxu1 %v1872_v49 }
  0x61   :  { %521 = vmatpush1.msra.mxu0 %v1497_v22  ;;  %626 = vmatprep.subr.mxu1 %v1873_v30 }
  0x62   :  { %524 = vmatprep.subr.mxu0 %v1506_v48  ;;  %628 = vmatpush1.msra.mxu1 %v1874_v39 }
  0x63   :  { %527 = vmatpush1.msra.mxu0 %v1518_v7  ;;  %630 = vmatprep.subr.mxu1 %v1875_v37 }
  0x64   :  { %199 = vmatmul.mubr.f32.gmra.mxu0 %v198_v9  ;;  %530 = vmatprep.subr.mxu0 %v1527_v33  ;;  %v1878_v9 = vand.u32 4294901760, %v1169_v19  ;;  %v1885_v19 = vand.u32 4294901760, %v1211_v36  ;;  %v1890_v36 = vand.u32 4294901760, %v1513_v14 }
  0x65   :  { %533 = vmatpush1.msra.mxu0 %v1540_v55  ;;  %632 = vmatpush1.msra.mxu1 %v1876_v35  ;;  %v1883_v35 = vld [vmem:[#allocation28_spill] sm:$0xff] }
  0x66   :  { %536 = vmatprep.subr.mxu0 %v1550_v56  ;;  %634 = vmatprep.subr.mxu1 %v1877_v34  ;;  %v1879_v56 = vld [vmem:[#allocation26_spill] sm:$0xff]  ;;  %v1880_v34 = vand.u32 4294901760, %v1182_v24  ;;  %v1886_v24 = vld [vmem:[#allocation29_spill] sm:$0xff] }
  0x67   :  { %539 = vmatpush1.msra.mxu0 %v1558_v54  ;;  %572 = vmatprep.mubr.f32.mxu0 %v1865_v38  ;;  %v1881_v54 = vld [vmem:[#allocation27_spill] sm:$0xff] }
  0x68   :  { %636 = vmatpush1.msra.mxu1 %v1366_v1  ;;  %436 = vmatprep.mubr.f32.mxu1 %v1865_v38  ;;  %v1882_v1 = vand.u32 4294901760, %v1188_v26  ;;  %v1888_v26 = vand.u32 4294901760, %v1238_v46  ;;  %v1893_v46 = vand.u32 4294901760, %v1298_v44  ;;  %v1911_v44 = vand.u32 4294901760, %v1506_v48 }
  0x69   :  { %575 = vmatmul.mubr.f32.vlgmr.msra.gmra.mxu0 %v1513_v14  ;;  %638 = vmatprep.subr.mxu1 %v1380_v20  ;;  %v1884_v20 = vand.u32 4294901760, %v1202_v32  ;;  %v1889_v32 = vand.u32 4294901760, %v1264_v60  ;;  %v1894_v60 = vand.u32 4294901760, %v1310_v53  ;;  %v1912_v53 = vand.u32 4294901760, %v1518_v7 }
  0x6a   :  { %707 = vmatprep.subr.mxu0 %v1878_v9  ;;  %438 = vmatmul.mubr.f32.gmra.mxu1 %v1583_v21 }
  0x6b   :  { %640 = vmatpush1.msra.mxu1 %v1879_v56  ;;  %711 = vmatpush1.msra.mxu0 %v1880_v34  ;;  %v1887_v34 = vand.u32 4294901760, %v1224_v41  ;;  %v1892_v41 = vand.u32 4294901760, %v1287_v13  ;;  %v1900_v13 = vand.u32 4294901760, %v1388_v50  ;;  %v1918_v50 = vld [vmem:[#allocation23_spill] sm:$0xff] }
  0x6c   :  { %642 = vmatprep.subr.mxu1 %v1881_v54  ;;  %715 = vmatprep.subr.mxu0 %v1882_v1  ;;  %v1916_v1 = vld [vmem:[#allocation31_spill] sm:$0xff] }
  0x6d   :  { %580 = vmatprep.mubr.f32.mxu0 %v1865_v38  ;;  %644 = vmatpush1.msra.mxu1 %v1883_v35 }
  0x6e   :  { %719 = vmatpush1.msra.mxu0 %v1884_v20  ;;  %646 = vmatprep.subr.mxu1 %v1427_v27  ;;  %v1891_v20 = vand.u32 4294901760, %v1276_v2  ;;  %v1895_v2 = vand.u32 4294901760, %v1324_v59  ;;  %v1914_v59 = vand.u32 4294901760, %v1540_v55 }
  0x6f   :  { %583 = vmatmul.mubr.f32.gmra.mxu0 %v1594_v57  ;;  %723 = vmatprep.subr.mxu0 %v1885_v19 }
  0x70   :  { %648 = vmatpush1.msra.mxu1 %v1886_v24  ;;  %727 = vmatpush1.msra.mxu0 %v1887_v34 }
  0x71   :  { %650 = vmatprep.subr.mxu1 %v1460_v42  ;;  %731 = vmatprep.subr.mxu0 %v1888_v26 }
  0x72   :  { %652 = vmatpush1.msra.mxu1 %v1476_v31  ;;  %685 = vmatprep.mubr.f32.mxu1 %v1865_v38 }
  0x73   :  { %735 = vmatpush1.msra.mxu0 %v1889_v32  ;;  %689 = vmatmul.mubr.f32.vlgmr.msra.gmra.mxu1 %v1890_v36 }
  0x74   :  { %739 = vmatprep.subr.mxu0 %v1891_v20  ;;  %880 = vmatprep.subr.mxu1 %v1149_v4  ;;  %v1896_v4 = vand.u32 4294901760, %v1594_v57 }
  0x75   :  { %743 = vmatpush1.msra.mxu0 %v1892_v41  ;;  %882 = vmatpush1.msra.mxu1 %v1151_v5  ;;  %v1897_v5 = vand.u32 4294901760, %v1336_v43  ;;  %v1910_v43 = vand.u32 4294901760, %v1497_v22 }
  0x76   :  { %747 = vmatprep.subr.mxu0 %v1893_v46  ;;  %884 = vmatprep.subr.mxu1 %v1153_v6  ;;  %v1898_v6 = vand.u32 4294901760, %v1357_v58  ;;  %v1913_v58 = vand.u32 4294901760, %v1527_v33 }
  0x77   :  { %694 = vmatprep.mubr.f32.mxu1 %v1865_v38  ;;  %751 = vmatpush1.msra.mxu0 %v1894_v60 }
  0x78   :  { %886 = vmatpush1.msra.mxu1 %v1155_v10  ;;  %755 = vmatprep.subr.mxu0 %v1895_v2  ;;  %v1899_v10 = vand.u32 4294901760, %v1370_v8  ;;  %v1915_v8 = vld [vmem:[#allocation22_spill] sm:$0xff] }
  0x79   :  { %698 = vmatmul.mubr.f32.gmra.mxu1 %v1896_v4  ;;  %888 = vmatprep.subr.mxu1 %v1157_v11  ;;  %v1901_v11 = vand.u32 4294901760, %v1401_v63 }
  0x7a   :  { %759 = vmatpush1.msra.mxu0 %v1897_v5  ;;  %890 = vmatpush1.msra.mxu1 %v1159_v12  ;;  %v1902_v12 = vand.u32 4294901760, %v1413_v61  ;;  %v1908_v61 = vand.u32 4294901760, %v1489_v62  ;;  %v1922_v62 = vld [vmem:[#allocation30_spill] sm:$0xff] }
  0x7b   :  { %763 = vmatprep.subr.mxu0 %v1898_v6  ;;  %892 = vmatprep.subr.mxu1 %v1162_v16  ;;  %v1903_v16 = vand.u32 4294901760, %v1424_v28  ;;  %v1917_v28 = vand.u32 4294901760, %v1916_v1 }
  0x7c   :  { %767 = vmatpush1.msra.mxu0 %v1899_v10  ;;  %894 = vmatpush1.msra.mxu1 %v1164_v17  ;;  %v1904_v17 = vand.u32 4294901760, %v1438_v3  ;;  %v1909_v3 = vld [vmem:[#allocation17_spill] sm:$0xff] }
  0x7d   :  { %771 = vmatprep.subr.mxu0 %v1900_v13  ;;  %896 = vmatprep.subr.mxu1 %v1166_v18  ;;  %v1905_v18 = vand.u32 4294901760, %v1450_v51  ;;  %v1921_v51 = vld [vmem:[#allocation24_spill] sm:$0xff] }
  0x7e   :  { %775 = vmatpush1.msra.mxu0 %v1901_v11  ;;  %898 = vmatpush1.msra.mxu1 %v1179_v23  ;;  %v1906_v23 = vand.u32 4294901760, %v1469_v0  ;;  %v1923_v0 = vld [vmem:[#allocation25_spill] sm:$0xff] }
  0x7f   :  { %779 = vmatprep.subr.mxu0 %v1902_v12  ;;  %900 = vmatprep.subr.mxu1 %v1185_v25  ;;  %v1907_v25 = vand.u32 4294901760, %v1480_v15 }
  0x80   :  { %783 = vmatpush1.msra.mxu0 %v1903_v16  ;;  %902 = vmatpush1.msra.mxu1 %v1866_v40 }
  0x81   :  { %787 = vmatprep.subr.mxu0 %v1904_v17  ;;  %904 = vmatprep.subr.mxu1 %v1867_v45 }
  0x82   :  { %791 = vmatpush1.msra.mxu0 %v1905_v18  ;;  %906 = vmatpush1.msra.mxu1 %v1868_v47 }
  0x83   :  { %795 = vmatprep.subr.mxu0 %v1906_v23  ;;  %908 = vmatprep.subr.mxu1 %v1869_v29 }
  0x84   :  { %799 = vmatpush1.msra.mxu0 %v1907_v25  ;;  %910 = vmatpush1.msra.mxu1 %v1870_v52 }
  0x85   :  { %803 = vmatprep.subr.mxu0 %v1908_v61  ;;  %912 = vmatprep.subr.mxu1 %v1909_v3 }
  0x86   :  { %807 = vmatpush1.msra.mxu0 %v1910_v43  ;;  %914 = vmatpush1.msra.mxu1 %v1872_v49 }
  0x87   :  { %811 = vmatprep.subr.mxu0 %v1911_v44  ;;  %916 = vmatprep.subr.mxu1 %v1873_v30  ;;  %v1919_v30 = vld [vmem:[#allocation32_spill] sm:$0xff] }
  0x88   :  { %815 = vmatpush1.msra.mxu0 %v1912_v53  ;;  %918 = vmatpush1.msra.mxu1 %v1874_v39  ;;  %v1920_v63 = vand.u32 4294901760, %v1919_v30 }
  0x89   :  { %819 = vmatprep.subr.mxu0 %v1913_v58  ;;  %920 = vmatprep.subr.mxu1 %v1875_v37 }
  0x8a   :  { %823 = vmatpush1.msra.mxu0 %v1914_v59  ;;  %922 = vmatpush1.msra.mxu1 %v1915_v8 }
  0x8b   :  { %827 = vmatprep.subr.mxu0 %v1917_v28  ;;  %924 = vmatprep.subr.mxu1 %v1918_v50 }
  0x8c   :  { %831 = vmatpush1.msra.mxu0 %v1920_v63  ;;  %864 = vmatprep.mubr.f32.mxu0 %v1865_v38 }
  0x8d   :  { %926 = vmatpush1.msra.mxu1 %v1921_v51  ;;  %866 = vmatmul.mubr.f32.vlgmr.msra.gmra.mxu0 %v1922_v62 }
  0x8e   :  { %928 = vmatprep.subr.mxu1 %v1923_v0  ;;  %871 = vmatprep.mubr.f32.mxu0 %v1865_v38 }
  0x8f   :  { %930 = vmatpush1.msra.mxu1 %v1879_v56  ;;  %975 = vmatprep.mubr.f32.mxu1 %v1865_v38 }
  0x90   :  { %932 = vmatprep.subr.mxu1 %v1881_v54 }
  0x91   :  { %934 = vmatpush1.msra.mxu1 %v1883_v35  ;;  %873 = vmatmul.mubr.f32.gmra.mxu0 %v1583_v21 }
  0x92   :  { %936 = vmatprep.subr.mxu1 %v1427_v27 }
  0x93   :  { %938 = vmatpush1.msra.mxu1 %v1886_v24 }
  0x94   :  { %940 = vmatprep.subr.mxu1 %v1460_v42 }
  0x95   :  { %942 = vmatpush1.msra.mxu1 %v1476_v31 }
  0x96   :  { %977 = vmatmul.mubr.f32.vlgmr.msra.gmra.mxu1 %v1922_v62 }
  0x97   :  { %982 = vmatprep.mubr.f32.mxu1 %v1865_v38 }
  0x9a   :  { %984 = vmatmul.mubr.f32.gmra.mxu1 %v1583_v21 }
 0x108   :  { %v189_v15 = vpop.f32.mrf.mxu0 }
 0x10a   :  { %v191_v7 = vpop.f32.mrf.mxu0 }
 0x10e   :  { %v432_v22 = vpop.f32.mrf.mxu1 }
 0x10f   :  { %v433_v57 = vadd.f32 %v432_v22, %v189_v15 }
 0x110   :  { %v434_v14 = vpop.f32.mrf.mxu1 }
 0x111   :  { %v435_v60 = vadd.f32 %v434_v14, %v191_v7 }
 0x124   :  { %v200_v37 = vpop.f32.mrf.mxu0 }
 0x126   :  { %v202_v48 = vpop.f32.mrf.mxu0 }
 0x129   :  { %v576_v54 = vpop.f32.mrf.mxu0 }
 0x12a   :  { %v439_v27 = vpop.f32.mrf.mxu1  ;;  %v577_v38 = vadd.f32 %v576_v54, %v433_v57 }
 0x12b   :  { %v578_v33 = vpop.f32.mrf.mxu0  ;;  %v440_v40 = vadd.f32 %v439_v27, %v200_v37 }
 0x12c   :  { %v441_v49 = vpop.f32.mrf.mxu1  ;;  %v579_v2 = vadd.f32 %v578_v33, %v435_v60 }
 0x12d   :  { %v442_v4 = vadd.f32 %v441_v49, %v202_v48 }
 0x12f   :  { %v584_v55 = vpop.f32.mrf.mxu0 }
 0x130   :  { %v585_v29 = vadd.f32 %v584_v55, %v440_v40 }
 0x131   :  { %v586_v56 = vpop.f32.mrf.mxu0 }
 0x132   :  { %v587_v10 = vadd.f32 %v586_v56, %v442_v4 }
 0x133   :  { %v690_v42 = vpop.f32.mrf.mxu1 }
 0x134   :  { %v691_v45 = vadd.f32 %v690_v42, %v577_v38 }
 0x135   :  { %v692_v31 = vpop.f32.mrf.mxu1 }
 0x136   :  { %v693_v5 = vadd.f32 %v692_v31, %v579_v2 }
 0x139   :  { %v699_v39 = vpop.f32.mrf.mxu1 }
 0x13a   :  { %v700_v24 = vadd.f32 %v699_v39, %v585_v29 }
 0x13b   :  { %v701_v47 = vpop.f32.mrf.mxu1 }
 0x13c   :  { %v702_v17 = vadd.f32 %v701_v47, %v587_v10 }
 0x14d   :  { %v867_v35 = vpop.f32.mrf.mxu0 }
 0x14e   :  { %v868_v52 = vadd.f32 %v867_v35, %v691_v45 }
 0x14f   :  { %v869_v21 = vpop.f32.mrf.mxu0 }
 0x150   :  { %v870_v13 = vadd.f32 %v869_v21, %v693_v5 }
 0x151   :  { %v874_v9 = vpop.f32.mrf.mxu0 }
 0x152   :  { %v875_v32 = vadd.f32 %v874_v9, %v700_v24 }
 0x153   :  { %v876_v16 = vpop.f32.mrf.mxu0 }
 0x154   :  { %v877_v3 = vadd.f32 %v876_v16, %v702_v17 }
 0x156   :  { %v978_v19 = vpop.f32.mrf.mxu1 }
 0x157   :  { %v979_v34 = vadd.f32 %v978_v19, %v868_v52 }
 0x158   :  { %v980_v26 = vpop.f32.mrf.mxu1 }
 0x159   :  { %v1007_v36 = vmul.f32 0.70710677, %v979_v34  ;;  %v1005_v11 = vmul.f32 0.5, %v979_v34  ;;  %v981_v18 = vadd.f32 %v980_v26, %v870_v13 }
 0x15a   :  { %v985_v20 = vpop.f32.mrf.mxu1 }
 0x15b   :  { %1045 = verf.f32 %v1007_v36  ;;  %v986_v41 = vadd.f32 %v985_v20, %v875_v32 }
 0x15c   :  { %v987_v61 = vpop.f32.mrf.mxu1 }
 0x15d   :  { %v1008_v46 = vmul.f32 0.70710677, %v986_v41  ;;  %v1006_v44 = vmul.f32 0.5, %v986_v41  ;;  %v988_v58 = vadd.f32 %v987_v61, %v877_v3 }
 0x15f   :  { %1047 = verf.f32 %v1008_v46 }
 0x168   :  { %v1046_v6 = vpop.eup %1045 }
 0x169   :  { %v1011_v12 = vadd.f32 1.0, %v1046_v6 }
 0x16b   :  { %v1013_v23 = vmul.f32 %v1011_v12, %v1005_v11 }
 0x16c   :  { %v1048_v25 = vpop.eup %1047 }
 0x16d   :  { %v1015_v43 = vmul.f32 %v1013_v23, %v981_v18  ;;  %v1012_v53 = vadd.f32 1.0, %v1048_v25 }
 0x16f   :  { %1017 = vst [vmem:[#allocation8] sm:$0xff] %v1015_v43  ;;  %v1014_v59 = vmul.f32 %v1012_v53, %v1006_v44 }
 0x171   :  { %v1016_v8 = vmul.f32 %v1014_v59, %v988_v58 }
 0x173   :  { %1018 = vst [vmem:[#allocation8 + $0x8] sm:$0xff] %v1016_v8 }
 0x174   :  { %1100 = shalt.err (!%p1097_p0)
}
 0x175   :  { %1030 = dma.vmem_to_hbm [thread:$0]  %s1025_s1, 256, %s1769_s2, [#allocation5], %s1116_s12, %s1116_s12, %s1117_s13  }
 0x176   :  { %1113 = dma.done.wait [#allocation5], 256  }
 0x177   :  { %1114 = vsyncadd [#allocation5], 4294967040 }
 0x178   :  { %1034 = vsyncpa [#allocation4], 1 }
 0x179   :  { %1035 = vsyncpa [#allocation7], 1 }
 0x17a   :  { %1036 = vsyncpa [#allocation5], 1 }

</bundles_post_ra>
